<compile_context>
chip_gen: v7x
topology: tpu7x:2x2x1
jax: 0.10.0
libtpu: 0.0.40
codegen_flags: <defaults>
</compile_context>

<pallas_src>
import functools

import jax
import jax.numpy as jnp
from jax.experimental import pallas as pl
from jax.experimental.pallas import tpu as pltpu


def _x_conv_kernel(x_ref, wx_ref, bx_ref, out_ref, *, C: int):
    """1x1 conv (channel mix) + ReLU on a (1, C, Sb, LANE) block.

    Every x[0, c] / out_ref[0, co] access is a dense (Sb, LANE) slab, so all
    VPU ops are full vregs and all stores are unmasked.  C is tiny (4), so the
    contraction is an unrolled VPU FMA chain with scalar weights from SMEM --
    no degenerate MXU matmul.
    """
    x = x_ref[...]                                        # (1, C, Sb, LANE) f32
    # Hoist the C*C scalar weights and C biases out of the channel loops.
    w = [[wx_ref[ci * C + co] for co in range(C)] for ci in range(C)]
    b = [bx_ref[co] for co in range(C)]
    for co in range(C):
        acc = x[0, 0] * w[0][co]
        for ci in range(1, C):
            acc = acc + x[0, ci] * w[ci][co]
        acc = acc + b[co]
        out_ref[0, co] = jnp.maximum(acc, 0.0).astype(out_ref.dtype)   # full-slab store


def stochastic_depth_forward(x_nchw, register, wx, bx, wr, br, key,
                             *, p: float = 0.2, training: bool = True):
    assert 0.0 < p < 1.0, "p must satisfy 0 < p < 1"
    N, C, H, W = x_nchw.shape
    HW = H * W
    itemsize = jnp.dtype(x_nchw.dtype).itemsize

    # --- lane-dense view of x (free reshape, no HBM transpose) ---------------
    if HW % 128 == 0:
        LANE = 128
        S = HW // 128
    else:
        LANE = HW          # fallback: whole spatial extent on the lane axis
        S = 1
    x4 = x_nchw.reshape(N, C, S, LANE)

    # --- spatial tile: ~2 MiB per block (double-buffered in+out ~= 8 MiB VMEM,
    #     safe on v5e's 16 MiB scoped default and v7x's 64 MiB physical). ------
    bytes_per_row = C * LANE * itemsize
    cap = max(1, (2 * 1024 * 1024) // bytes_per_row)
    Sb = min(S, cap)
    if Sb < S:
        # keep the second-minor block dim a multiple of 8 (sublane tiling)
        Sb = max(8, (Sb // 8) * 8)
        Sb = min(Sb, S)

    # Batch stays its own "parallel" grid axis so v7x's 2 TensorCores both get
    # work (>= 2 steps whenever N >= 2); on v5e/v6e extra steps just loop.
    grid = (N, pl.cdiv(S, Sb))

    x_out4 = pl.pallas_call(
        functools.partial(_x_conv_kernel, C=C),
        out_shape=jax.ShapeDtypeStruct((N, C, S, LANE), x_nchw.dtype),
        grid=grid,
        in_specs=[
            pl.BlockSpec((1, C, Sb, LANE), lambda n, s: (n, 0, s, 0)),
            pl.BlockSpec(memory_space=pltpu.MemorySpace.SMEM),   # wx (flat C*C)
            pl.BlockSpec(memory_space=pltpu.MemorySpace.SMEM),   # bx (flat C)
        ],
        out_specs=pl.BlockSpec((1, C, Sb, LANE), lambda n, s: (n, 0, s, 0)),
        compiler_params=pltpu.CompilerParams(
            dimension_semantics=("parallel", "parallel")),
    )(x4, wx.reshape(C * C), bx.reshape(C))
    x_new = x_out4.reshape(N, C, H, W)

    # --- StochasticDepth noise: one scalar Bernoulli(1-p)/(1-p) --------------
    # (torch draws a [1]*x.ndim tensor -> a single scalar for the whole batch)
    if training:
        keep = jax.random.bernoulli(key, 1.0 - p)
        noise = keep.astype(jnp.float32) / jnp.float32(1.0 - p)
    else:
        noise = jnp.float32(1.0)

    # --- register path: tiny (N,D)@(D,D) linear + scalar scale ---------------
    # Done in plain XLA: a dedicated pallas_call launch costs more than the
    # math at this size (perf review item #2).
    reg_new = jnp.dot(register, wr, preferred_element_type=jnp.float32) + br
    reg_out = (noise * reg_new).astype(register.dtype)

    return x_new, reg_out


if __name__ == "__main__":
    key = jax.random.PRNGKey(0)
    k_x, k_reg, k_wx, k_bx, k_wr, k_br, k_noise = jax.random.split(key, 7)

    N, C, H, W = 2, 4, 16, 16
    D = 32
    p = 0.2

    x = jax.random.normal(k_x, (N, C, H, W), dtype=jnp.float32)
    register = jax.random.normal(k_reg, (N, D), dtype=jnp.float32)

    # Deterministic synthetic parameters of the wrapped inner module.
    wx = jax.random.normal(k_wx, (C, C), dtype=jnp.float32) * 0.1
    bx = jax.random.normal(k_bx, (1, C), dtype=jnp.float32) * 0.1
    wr = jax.random.normal(k_wr, (D, D), dtype=jnp.float32) * 0.1
    br = jax.random.normal(k_br, (1, D), dtype=jnp.float32) * 0.1

    x_new, reg_new = stochastic_depth_forward(
        x, register, wx, bx, wr, br, k_noise, p=p, training=True)
    jax.block_until_ready((x_new, reg_new))

    # Shape / dtype sanity (matches the PyTorch module's outputs).
    assert x_new.shape == (N, C, H, W) and x_new.dtype == jnp.float32
    assert reg_new.shape == (N, D) and reg_new.dtype == jnp.float32

    # Numerical check against a pure-JAX reference of the same forward.
    x_ref = jnp.maximum(
        jnp.einsum("nchw,ck->nkhw", x, wx) + bx.reshape(1, C, 1, 1), 0.0)
    assert jnp.allclose(x_new, x_ref, atol=1e-5, rtol=1e-5)

    reg_lin = register @ wr + br
    keep = jax.random.bernoulli(k_noise, 1.0 - p).astype(jnp.float32) / (1.0 - p)
    assert jnp.allclose(reg_new, keep * reg_lin, atol=1e-5, rtol=1e-5)

    print("KERNEL_OK")
</pallas_src>

<mosaic_0001>
module attributes {stable_mosaic.version = 11 : i64} {
  func.func @_x_conv_kernel(%arg0: i32, %arg1: i32, %arg2: memref<1x4x2x128xf32, #tpu.memory_space<vmem>>, %arg3: memref<16xf32, #tpu.memory_space<smem>>, %arg4: memref<4xf32, #tpu.memory_space<smem>>, %arg5: memref<1x4x2x128xf32, #tpu.memory_space<vmem>>) attributes {dimension_semantics = [#tpu.dimension_semantics<parallel>, #tpu.dimension_semantics<parallel>], iteration_bounds = array<i64: 2, 1>, scalar_prefetch = 0 : i64, scratch_operands = 0 : i64, tpu.core_type = #tpu.core_type<tc>, window_params = [{transform_indices = @transform_0, window_bounds = array<i64: 1, 4, 2, 128>}, {transform_indices = @transform_1, window_bounds = array<i64: 16>}, {transform_indices = @transform_2, window_bounds = array<i64: 4>}, {transform_indices = @transform_3, window_bounds = array<i64: 1, 4, 2, 128>}]} {
    %c0 = arith.constant 0 : index
    %c0_0 = arith.constant 0 : index
    %c0_1 = arith.constant 0 : index
    %c0_2 = arith.constant 0 : index
    %0 = vector.load %arg2[%c0, %c0_0, %c0_1, %c0_2] : memref<1x4x2x128xf32, #tpu.memory_space<vmem>>, vector<1x4x2x128xf32>
    %c0_3 = arith.constant 0 : index
    %1 = memref.load %arg3[%c0_3] : memref<16xf32, #tpu.memory_space<smem>>
    %c1 = arith.constant 1 : index
    %2 = memref.load %arg3[%c1] : memref<16xf32, #tpu.memory_space<smem>>
    %c2 = arith.constant 2 : index
    %3 = memref.load %arg3[%c2] : memref<16xf32, #tpu.memory_space<smem>>
    %c3 = arith.constant 3 : index
    %4 = memref.load %arg3[%c3] : memref<16xf32, #tpu.memory_space<smem>>
    %c4 = arith.constant 4 : index
    %5 = memref.load %arg3[%c4] : memref<16xf32, #tpu.memory_space<smem>>
    %c5 = arith.constant 5 : index
    %6 = memref.load %arg3[%c5] : memref<16xf32, #tpu.memory_space<smem>>
    %c6 = arith.constant 6 : index
    %7 = memref.load %arg3[%c6] : memref<16xf32, #tpu.memory_space<smem>>
    %c7 = arith.constant 7 : index
    %8 = memref.load %arg3[%c7] : memref<16xf32, #tpu.memory_space<smem>>
    %c8 = arith.constant 8 : index
    %9 = memref.load %arg3[%c8] : memref<16xf32, #tpu.memory_space<smem>>
    %c9 = arith.constant 9 : index
    %10 = memref.load %arg3[%c9] : memref<16xf32, #tpu.memory_space<smem>>
    %c10 = arith.constant 10 : index
    %11 = memref.load %arg3[%c10] : memref<16xf32, #tpu.memory_space<smem>>
    %c11 = arith.constant 11 : index
    %12 = memref.load %arg3[%c11] : memref<16xf32, #tpu.memory_space<smem>>
    %c12 = arith.constant 12 : index
    %13 = memref.load %arg3[%c12] : memref<16xf32, #tpu.memory_space<smem>>
    %c13 = arith.constant 13 : index
    %14 = memref.load %arg3[%c13] : memref<16xf32, #tpu.memory_space<smem>>
    %c14 = arith.constant 14 : index
    %15 = memref.load %arg3[%c14] : memref<16xf32, #tpu.memory_space<smem>>
    %c15 = arith.constant 15 : index
    %16 = memref.load %arg3[%c15] : memref<16xf32, #tpu.memory_space<smem>>
    %c0_4 = arith.constant 0 : index
    %17 = memref.load %arg4[%c0_4] : memref<4xf32, #tpu.memory_space<smem>>
    %c1_5 = arith.constant 1 : index
    %18 = memref.load %arg4[%c1_5] : memref<4xf32, #tpu.memory_space<smem>>
    %c2_6 = arith.constant 2 : index
    %19 = memref.load %arg4[%c2_6] : memref<4xf32, #tpu.memory_space<smem>>
    %c3_7 = arith.constant 3 : index
    %20 = memref.load %arg4[%c3_7] : memref<4xf32, #tpu.memory_space<smem>>
    %21 = vector.extract_strided_slice %0 {offsets = [0, 0, 0, 0], sizes = [1, 1, 2, 128], strides = [1, 1, 1, 1]} : vector<1x4x2x128xf32> to vector<1x1x2x128xf32>
    %22 = vector.shape_cast %21 : vector<1x1x2x128xf32> to vector<2x128xf32>
    %23 = vector.broadcast %1 : f32 to vector<2x128xf32>
    %24 = arith.mulf %22, %23 : vector<2x128xf32>
    %25 = vector.extract_strided_slice %0 {offsets = [0, 1, 0, 0], sizes = [1, 1, 2, 128], strides = [1, 1, 1, 1]} : vector<1x4x2x128xf32> to vector<1x1x2x128xf32>
    %26 = vector.shape_cast %25 : vector<1x1x2x128xf32> to vector<2x128xf32>
    %27 = vector.broadcast %5 : f32 to vector<2x128xf32>
    %28 = arith.mulf %26, %27 : vector<2x128xf32>
    %29 = arith.addf %24, %28 : vector<2x128xf32>
    %30 = vector.extract_strided_slice %0 {offsets = [0, 2, 0, 0], sizes = [1, 1, 2, 128], strides = [1, 1, 1, 1]} : vector<1x4x2x128xf32> to vector<1x1x2x128xf32>
    %31 = vector.shape_cast %30 : vector<1x1x2x128xf32> to vector<2x128xf32>
    %32 = vector.broadcast %9 : f32 to vector<2x128xf32>
    %33 = arith.mulf %31, %32 : vector<2x128xf32>
    %34 = arith.addf %29, %33 : vector<2x128xf32>
    %35 = vector.extract_strided_slice %0 {offsets = [0, 3, 0, 0], sizes = [1, 1, 2, 128], strides = [1, 1, 1, 1]} : vector<1x4x2x128xf32> to vector<1x1x2x128xf32>
    %36 = vector.shape_cast %35 : vector<1x1x2x128xf32> to vector<2x128xf32>
    %37 = vector.broadcast %13 : f32 to vector<2x128xf32>
    %38 = arith.mulf %36, %37 : vector<2x128xf32>
    %39 = arith.addf %34, %38 : vector<2x128xf32>
    %40 = vector.broadcast %17 : f32 to vector<2x128xf32>
    %41 = arith.addf %39, %40 : vector<2x128xf32>
    %cst = arith.constant 0.000000e+00 : f32
    %42 = vector.broadcast %cst : f32 to vector<2x128xf32>
    %43 = arith.maximumf %41, %42 : vector<2x128xf32>
    %c0_8 = arith.constant 0 : index
    %c0_9 = arith.constant 0 : index
    %c0_10 = arith.constant 0 : index
    %c0_11 = arith.constant 0 : index
    %44 = vector.load %arg5[%c0_8, %c0_9, %c0_10, %c0_11] : memref<1x4x2x128xf32, #tpu.memory_space<vmem>>, vector<1x1x2x128xf32>
    %45 = vector.shape_cast %44 : vector<1x1x2x128xf32> to vector<2x128xf32>
    %46 = vector.shape_cast %43 : vector<2x128xf32> to vector<1x1x2x128xf32>
    tpu.vector_store %arg5[%c0_8, %c0_9, %c0_10, %c0_11], %46 {strides = array<i32>} : memref<1x4x2x128xf32, #tpu.memory_space<vmem>>, vector<1x1x2x128xf32>,
    %47 = vector.extract_strided_slice %0 {offsets = [0, 0, 0, 0], sizes = [1, 1, 2, 128], strides = [1, 1, 1, 1]} : vector<1x4x2x128xf32> to vector<1x1x2x128xf32>
    %48 = vector.shape_cast %47 : vector<1x1x2x128xf32> to vector<2x128xf32>
    %49 = vector.broadcast %2 : f32 to vector<2x128xf32>
    %50 = arith.mulf %48, %49 : vector<2x128xf32>
    %51 = vector.extract_strided_slice %0 {offsets = [0, 1, 0, 0], sizes = [1, 1, 2, 128], strides = [1, 1, 1, 1]} : vector<1x4x2x128xf32> to vector<1x1x2x128xf32>
    %52 = vector.shape_cast %51 : vector<1x1x2x128xf32> to vector<2x128xf32>
    %53 = vector.broadcast %6 : f32 to vector<2x128xf32>
    %54 = arith.mulf %52, %53 : vector<2x128xf32>
    %55 = arith.addf %50, %54 : vector<2x128xf32>
    %56 = vector.extract_strided_slice %0 {offsets = [0, 2, 0, 0], sizes = [1, 1, 2, 128], strides = [1, 1, 1, 1]} : vector<1x4x2x128xf32> to vector<1x1x2x128xf32>
    %57 = vector.shape_cast %56 : vector<1x1x2x128xf32> to vector<2x128xf32>
    %58 = vector.broadcast %10 : f32 to vector<2x128xf32>
    %59 = arith.mulf %57, %58 : vector<2x128xf32>
    %60 = arith.addf %55, %59 : vector<2x128xf32>
    %61 = vector.extract_strided_slice %0 {offsets = [0, 3, 0, 0], sizes = [1, 1, 2, 128], strides = [1, 1, 1, 1]} : vector<1x4x2x128xf32> to vector<1x1x2x128xf32>
    %62 = vector.shape_cast %61 : vector<1x1x2x128xf32> to vector<2x128xf32>
    %63 = vector.broadcast %14 : f32 to vector<2x128xf32>
    %64 = arith.mulf %62, %63 : vector<2x128xf32>
    %65 = arith.addf %60, %64 : vector<2x128xf32>
    %66 = vector.broadcast %18 : f32 to vector<2x128xf32>
    %67 = arith.addf %65, %66 : vector<2x128xf32>
    %cst_12 = arith.constant 0.000000e+00 : f32
    %68 = vector.broadcast %cst_12 : f32 to vector<2x128xf32>
    %69 = arith.maximumf %67, %68 : vector<2x128xf32>
    %c0_13 = arith.constant 0 : index
    %c1_14 = arith.constant 1 : index
    %c0_15 = arith.constant 0 : index
    %c0_16 = arith.constant 0 : index
    %70 = vector.load %arg5[%c0_13, %c1_14, %c0_15, %c0_16] : memref<1x4x2x128xf32, #tpu.memory_space<vmem>>, vector<1x1x2x128xf32>
    %71 = vector.shape_cast %70 : vector<1x1x2x128xf32> to vector<2x128xf32>
    %72 = vector.shape_cast %69 : vector<2x128xf32> to vector<1x1x2x128xf32>
    tpu.vector_store %arg5[%c0_13, %c1_14, %c0_15, %c0_16], %72 {strides = array<i32>} : memref<1x4x2x128xf32, #tpu.memory_space<vmem>>, vector<1x1x2x128xf32>,
    %73 = vector.extract_strided_slice %0 {offsets = [0, 0, 0, 0], sizes = [1, 1, 2, 128], strides = [1, 1, 1, 1]} : vector<1x4x2x128xf32> to vector<1x1x2x128xf32>
    %74 = vector.shape_cast %73 : vector<1x1x2x128xf32> to vector<2x128xf32>
    %75 = vector.broadcast %3 : f32 to vector<2x128xf32>
    %76 = arith.mulf %74, %75 : vector<2x128xf32>
    %77 = vector.extract_strided_slice %0 {offsets = [0, 1, 0, 0], sizes = [1, 1, 2, 128], strides = [1, 1, 1, 1]} : vector<1x4x2x128xf32> to vector<1x1x2x128xf32>
    %78 = vector.shape_cast %77 : vector<1x1x2x128xf32> to vector<2x128xf32>
    %79 = vector.broadcast %7 : f32 to vector<2x128xf32>
    %80 = arith.mulf %78, %79 : vector<2x128xf32>
    %81 = arith.addf %76, %80 : vector<2x128xf32>
    %82 = vector.extract_strided_slice %0 {offsets = [0, 2, 0, 0], sizes = [1, 1, 2, 128], strides = [1, 1, 1, 1]} : vector<1x4x2x128xf32> to vector<1x1x2x128xf32>
    %83 = vector.shape_cast %82 : vector<1x1x2x128xf32> to vector<2x128xf32>
    %84 = vector.broadcast %11 : f32 to vector<2x128xf32>
    %85 = arith.mulf %83, %84 : vector<2x128xf32>
    %86 = arith.addf %81, %85 : vector<2x128xf32>
    %87 = vector.extract_strided_slice %0 {offsets = [0, 3, 0, 0], sizes = [1, 1, 2, 128], strides = [1, 1, 1, 1]} : vector<1x4x2x128xf32> to vector<1x1x2x128xf32>
    %88 = vector.shape_cast %87 : vector<1x1x2x128xf32> to vector<2x128xf32>
    %89 = vector.broadcast %15 : f32 to vector<2x128xf32>
    %90 = arith.mulf %88, %89 : vector<2x128xf32>
    %91 = arith.addf %86, %90 : vector<2x128xf32>
    %92 = vector.broadcast %19 : f32 to vector<2x128xf32>
    %93 = arith.addf %91, %92 : vector<2x128xf32>
    %cst_17 = arith.constant 0.000000e+00 : f32
    %94 = vector.broadcast %cst_17 : f32 to vector<2x128xf32>
    %95 = arith.maximumf %93, %94 : vector<2x128xf32>
    %c0_18 = arith.constant 0 : index
    %c2_19 = arith.constant 2 : index
    %c0_20 = arith.constant 0 : index
    %c0_21 = arith.constant 0 : index
    %96 = vector.load %arg5[%c0_18, %c2_19, %c0_20, %c0_21] : memref<1x4x2x128xf32, #tpu.memory_space<vmem>>, vector<1x1x2x128xf32>
    %97 = vector.shape_cast %96 : vector<1x1x2x128xf32> to vector<2x128xf32>
    %98 = vector.shape_cast %95 : vector<2x128xf32> to vector<1x1x2x128xf32>
    tpu.vector_store %arg5[%c0_18, %c2_19, %c0_20, %c0_21], %98 {strides = array<i32>} : memref<1x4x2x128xf32, #tpu.memory_space<vmem>>, vector<1x1x2x128xf32>,
    %99 = vector.extract_strided_slice %0 {offsets = [0, 0, 0, 0], sizes = [1, 1, 2, 128], strides = [1, 1, 1, 1]} : vector<1x4x2x128xf32> to vector<1x1x2x128xf32>
    %100 = vector.shape_cast %99 : vector<1x1x2x128xf32> to vector<2x128xf32>
    %101 = vector.broadcast %4 : f32 to vector<2x128xf32>
    %102 = arith.mulf %100, %101 : vector<2x128xf32>
    %103 = vector.extract_strided_slice %0 {offsets = [0, 1, 0, 0], sizes = [1, 1, 2, 128], strides = [1, 1, 1, 1]} : vector<1x4x2x128xf32> to vector<1x1x2x128xf32>
    %104 = vector.shape_cast %103 : vector<1x1x2x128xf32> to vector<2x128xf32>
    %105 = vector.broadcast %8 : f32 to vector<2x128xf32>
    %106 = arith.mulf %104, %105 : vector<2x128xf32>
    %107 = arith.addf %102, %106 : vector<2x128xf32>
    %108 = vector.extract_strided_slice %0 {offsets = [0, 2, 0, 0], sizes = [1, 1, 2, 128], strides = [1, 1, 1, 1]} : vector<1x4x2x128xf32> to vector<1x1x2x128xf32>
    %109 = vector.shape_cast %108 : vector<1x1x2x128xf32> to vector<2x128xf32>
    %110 = vector.broadcast %12 : f32 to vector<2x128xf32>
    %111 = arith.mulf %109, %110 : vector<2x128xf32>
    %112 = arith.addf %107, %111 : vector<2x128xf32>
    %113 = vector.extract_strided_slice %0 {offsets = [0, 3, 0, 0], sizes = [1, 1, 2, 128], strides = [1, 1, 1, 1]} : vector<1x4x2x128xf32> to vector<1x1x2x128xf32>
    %114 = vector.shape_cast %113 : vector<1x1x2x128xf32> to vector<2x128xf32>
    %115 = vector.broadcast %16 : f32 to vector<2x128xf32>
    %116 = arith.mulf %114, %115 : vector<2x128xf32>
    %117 = arith.addf %112, %116 : vector<2x128xf32>
    %118 = vector.broadcast %20 : f32 to vector<2x128xf32>
    %119 = arith.addf %117, %118 : vector<2x128xf32>
    %cst_22 = arith.constant 0.000000e+00 : f32
    %120 = vector.broadcast %cst_22 : f32 to vector<2x128xf32>
    %121 = arith.maximumf %119, %120 : vector<2x128xf32>
    %c0_23 = arith.constant 0 : index
    %c3_24 = arith.constant 3 : index
    %c0_25 = arith.constant 0 : index
    %c0_26 = arith.constant 0 : index
    %122 = vector.load %arg5[%c0_23, %c3_24, %c0_25, %c0_26] : memref<1x4x2x128xf32, #tpu.memory_space<vmem>>, vector<1x1x2x128xf32>
    %123 = vector.shape_cast %122 : vector<1x1x2x128xf32> to vector<2x128xf32>
    %124 = vector.shape_cast %121 : vector<2x128xf32> to vector<1x1x2x128xf32>
    tpu.vector_store %arg5[%c0_23, %c3_24, %c0_25, %c0_26], %124 {strides = array<i32>} : memref<1x4x2x128xf32, #tpu.memory_space<vmem>>, vector<1x1x2x128xf32>,
    return
  }
  func.func @transform_0(%arg0: i32, %arg1: i32) -> (i32, i32, i32, i32) {
    %c0_i32 = arith.constant 0 : i32
    %c0_i32_0 = arith.constant 0 : i32
    %c0_i32_1 = arith.constant 0 : i32
    return %arg0, %c0_i32, %arg1, %c0_i32_0 : i32, i32, i32, i32
  }
  func.func @transform_1(%arg0: i32, %arg1: i32) -> i32 {
    %c0_i32 = arith.constant 0 : i32
    %c0_i32_0 = arith.constant 0 : i32
    return %c0_i32 : i32
  }
  func.func @transform_2(%arg0: i32, %arg1: i32) -> i32 {
    %c0_i32 = arith.constant 0 : i32
    %c0_i32_0 = arith.constant 0 : i32
    return %c0_i32 : i32
  }
  func.func @transform_3(%arg0: i32, %arg1: i32) -> (i32, i32, i32, i32) {
    %c0_i32 = arith.constant 0 : i32
    %c0_i32_0 = arith.constant 0 : i32
    %c0_i32_1 = arith.constant 0 : i32
    return %arg0, %c0_i32, %arg1, %c0_i32_0 : i32, i32, i32, i32
  }
}

</mosaic_0001>

<bundles_post_ra>
// kernel: tpu_custom_call.1
= control target key start
LH: loop header
LB: loop body
LE: loop exit
PB: predicated region body
PF: predicated region fallthrough
CT: control target
= control target key end

     0   :  { %8 = vsyncpa [#allocation3], 0  ;;  %s1003_s0 = inlined_call_operand.hbm [shape: f32[2,4,2,128], index: 0, kind: input, shape index: {}]   ;;  %s1004_s1 = inlined_call_operand.vmem [shape: f32[16], index: 1, kind: input, shape index: {}]   ;;  %s1005_s2 = inlined_call_operand.vmem [shape: f32[4], index: 2, kind: input, shape index: {}]   ;;  %s1006_s3 = inlined_call_operand.hbm [shape: f32[2,4,2,128], index: 3, kind: output, shape index: {}]  }
   0x1   :  { %10 = vsyncpa [#allocation3 + $0x1], 0 }
   0x2   :  { %11 = vsyncpa [#allocation5], 0 }
   0x3   :  { %12 = vsyncpa [#allocation8], 0 }
   0x4   :  { %13 = vsyncpa [#allocation4], 0 }
   0x5   :  { %15 = vsyncpa [#allocation4 + $0x1], 0  ;;  %s751_s12 = smov 0   ;;  %s753_s13 = smov 0  }
   0x6   :  { %s755_s14 = smov 0   ;;  %s757_s15 = smov 0  }
   0x7   :  { %s759_s16 = smov 0   ;;  %s761_s17 = smov 0  }
   0x8 LB: > { %s442_s18 = sadd.s32 4294967295, %s721_s17   ;;  %s443_s19 = sadd.s32 4294967294, %s721_s17   ;;  %s721_s17 = sphi %s761_s17, %s21_s17   ;;  %s717_s16 = sphi %s759_s16, %s1034_s16   ;;  %s713_s15 = sphi %s757_s15, %s1033_s15   ;;  %s709_s14 = sphi %s755_s14, %s1032_s14   ;;  %s705_s13 = sphi %s753_s13, %s1031_s13   ;;  %s701_s12 = sphi %s751_s12, %s1030_s12  }
   0x9   : > { %s42_s20 = sadd.s32 1, %s709_s14  ;;  %p49_p0 = scmp.ne.s32.totalorder %s709_s14, %s705_s13 }
   0xa   : > { %p50_p1 = scmp.eq.s32.totalorder %s721_s17, 0  ;;  %p55_p2 = scmp.ne.s32.totalorder %s705_s13, %s701_s12 }
   0xb   : > { %p789_p3 = scmp.eq.s32.totalorder %s442_s18, 0  ;;  %p123_p4 = scmp.eq.s32.totalorder %s442_s18, 1 }
   0xc   : > { %p793_p5 = por %p50_p1, %p49_p0  ;;  %p129_p6 = scmp.eq.s32.totalorder %s443_s19, 1 }
   0xd   : > { %s1014_s21 = scalar_select %p789_p3, 1, 0 }
   0xe   : > { %p799_p7 = por %p789_p3, %p55_p2  ;;  %p803_p8 = por %p123_p4, %p49_p0 }
   0xf   : > { %p807_p9 = por %p129_p6, %p55_p2  ;;  %p444_p10 = scmp.ge.s32.totalorder %s721_s17, 1 }
  0x10   : > { %s1016_s23 = scalar_select %p799_p7, 1, 0 }
  0x11   : > { %s1017_s24 = scalar_select %p803_p8, 1, 0 }
  0x12   : > { %s1018_s25 = scalar_select %p807_p9, 1, 0 }
  0x13   : > { %p136_p11 = scmp.lt.s32.totalorder %s721_s17, 3  ;;  %s149_s28 = sshll.u32 %s1004_s1, 4  ;;  %s150_s28 = int_to_ptr.vmem [resolvable:$true] %s149_s28 }
  0x14   : > { %p513_p0 = scmp.lt.s32.totalorder %s721_s17, 2  ;;  %s160_s5 = sshll.u32 %s1005_s2, 4  ;;  %s161_s5 = int_to_ptr.vmem [resolvable:$true] %s160_s5 }
  0x15   : > { %p816_p12 = pnand %p444_p10, %p136_p11  ;;  %s571_s8 = scalar_lea.vmem %s150_s28, 16 }
  0x16   : > { %p829_p2 = pnand %p513_p0, %p793_p5  ;;  %p572_p6 = scmp.ne.s32.totalorder %s150_s28, %s571_s8 }
  0x17   : > { %s1019_s29 = scalar_select %p816_p12, 1, 0 }
  0x18   : > { %p496_p1 = pneg %p816_p12  ;;  %p579_p9 = scmp.lt.s32.totalorder %s150_s28, %s150_s28 }
  0x19   : > { %s1020_s6 = scalar_select %p829_p2, 1, 0 }
  0x1a   : > { %p835_p4 = pnand %p496_p1, %p789_p3  ;;  %p580_p8 = scmp.lt.s32.totalorder %s571_s8, %s571_s8 }
  0x1c   : > { %p573_p10 = pneg %p835_p4  ;;  %p581_p7 = por %p580_p8, %p579_p9 }
  0x1e   : > { %p574_p11 = pnand %p573_p10, %p572_p6 }
  0x20   : > { %p575_p13 = pneg %p574_p11 }
  0x22   : > { %p582_p5 = pnand %p581_p7, %p575_p13 }
  0x24   : > { %585 = shalt.err (!%p582_p5)
}
  0x25   : > { %s723_s9 = smov [#allocation6]   ;;  %s586_s10 = scalar_lea.vmem %s161_s5, 16 }
  0x26   : > { %499 = dma.vmem_to_smem (!%p835_p4), %s150_s28, 16, %s723_s9, [#allocation5]  }
  0x27   : > { %p587_p0 = scmp.ne.s32.totalorder %s161_s5, %s586_s10  ;;  %p594_p12 = scmp.lt.s32.totalorder %s161_s5, %s161_s5 }
  0x28   : > { %p595_p2 = scmp.lt.s32.totalorder %s586_s10, %s586_s10 }
  0x29   : > { %p589_p1 = pnand %p587_p0, %p573_p10 }
  0x2a   : > { %p596_p6 = por %p595_p2, %p594_p12 }
  0x2b   : > { %p590_p3 = pneg %p589_p1 }
  0x2d   : > { %p597_p11 = pnand %p596_p6, %p590_p3 }
  0x2f   : > { %600 = shalt.err (!%p597_p11)
}
  0x30   : > { %s724_s11 = smov [#allocation7]   ;;  %s33_s18 = sadd.s32 1, %s717_s16 }
  0x31   : > { %502 = dma.vmem_to_smem (!%p835_p4), %s161_s5, 16, %s724_s11, [#allocation8]  }
  0x32   : > { %s171_s19 = sand.u32 1, %s709_s14   ;;  %p35_p7 = scmp.ge.s32.totalorder %s33_s18, 2 }
  0x33   : > { %s448_s22 = sshll.u32 %s171_s19, 3  ;;  %s482_s26 = sshll.u32 %s717_s16, 7 }
  0x34   : > { %s1036_s18 = smov (%p35_p7, %s33_s18), 0  ;;  %s853_s30 = scalar_lea.hbm %s1003_s0, %s482_s26 }
  0x35   : > { %s37_s4 = ssub.s32 %s717_s16, %s1036_s18  ;;  %s175_s5 = scalar_lea.vmem [#allocation2], %s448_s22 }
  0x36   : > { %s183_s7 = sshll.u32 %s175_s5, 4  ;;  %p40_p3 = scmp.eq.s32.totalorder %s37_s4, 0  ;;  %s857_s7 = int_to_ptr.vmem [resolvable:$true] %s183_s7 }
  0x37   : > { %s864_s9 = scalar_lea.sflag [#allocation3], %s171_s19  ;;  %s601_s10 = scalar_lea.hbm %s853_s30, 128 }
  0x38   : > { %s862_s8 = scalar_select %p40_p3, %s709_s14, %s42_s20  }
  0x39   : > { %p602_p8 = scmp.ne.s32.totalorder %s853_s30, %s601_s10  ;;  %p1022_p9 = scmp.ne.s32.totalorder %s1020_s6, 0 }
  0x3a   : > { %s606_s22 = scalar_lea.hbm %s1003_s0, 256  ;;  %p607_p4 = scmp.lt.u32.totalorder %s853_s30, %s1003_s0 }
  0x3b   : > { %p603_p12 = pneg %p1022_p9  ;;  %p608_p10 = scmp.lt.u32.totalorder %s606_s22, %s601_s10 }
  0x3c   : > { %p610_p0 = scmp.lt.u32.totalorder %s601_s10, %s853_s30 }
  0x3d   : > { %p604_p13 = pnand %p603_p12, %p602_p8  ;;  %p609_p5 = por %p608_p10, %p607_p4 }
  0x3f   : > { %p605_p2 = pneg %p604_p13  ;;  %p611_p1 = por %p610_p0, %p609_p5 }
  0x41   : > { %p612_p6 = pnand %p611_p1, %p605_p2 }
  0x43   : > { %615 = shalt.err (!%p612_p6)
}
  0x44   : > { %s616_s20 = scalar_lea.vmem %s857_s7, 128  ;;  %s725_s19 = smov [#allocation2]  }
  0x45   : > { %p617_p11 = scmp.ne.s32.totalorder %s857_s7, %s616_s20  ;;  %s621_s4 = sshll.u32 %s725_s19, 4  ;;  %s622_s4 = int_to_ptr.vmem [resolvable:$false] %s621_s4 }
  0x46   : > { %s623_s5 = scalar_lea.vmem %s622_s4, 256  ;;  %p624_p8 = scmp.lt.s32.totalorder %s857_s7, %s622_s4 }
  0x47   : > { %p619_p7 = pnand %p617_p11, %p603_p12  ;;  %p625_p13 = scmp.lt.s32.totalorder %s623_s5, %s616_s20 }
  0x49   : > { %p620_p3 = pneg %p619_p7  ;;  %p626_p4 = por %p625_p13, %p624_p8 }
  0x4b   : > { %p627_p10 = pnand %p626_p4, %p620_p3 }
  0x4d   : > { %630 = shalt.err (!%p627_p10)
}
  0x4e   : > { %s726_s10 = smov 32   ;;  %s727_s11 = smov 2  }
  0x4f   : > { %506 = dma.hbm_to_vmem [thread:$0]  (!%p1022_p9), %s853_s30, 128, %s857_s7, %s864_s9, %s726_s10, %s726_s10, %s727_s11  }
  0x50   : > { %p1023_p12 = scmp.ne.s32.totalorder %s1019_s29, 0 }
  0x51   : > { %s895_s26 = sand.u32 (!%p1023_p12), 1, %s705_s13   ;;  %p1024_p2 = scmp.ne.s32.totalorder (!%p1023_p12), %s1016_s23, 0 }
  0x52   : > { %195 = sbr.rel (%p1023_p12) target bundleno = 140 (0x8c), region = 32  ;;  %s1013_s22 = sshll.u32 (!%p1023_p12), %s895_s26, 3 }
  0x53   : > { %s198_s27 = scalar_lea.sflag (!%p1023_p12), [#allocation3], %s895_s26  ;;  %s201_s28 = scalar_lea.vmem (!%p1023_p12), [#allocation2], %s1013_s22 }
  0x59   : > { %684 = dma.done.wait (%p1024_p2), %s198_s27, 128  }
  0x5a   : > { %686 = vsyncadd (%p1024_p2), %s198_s27, 4294967168  ;;  %p1025_p9 = scmp.ne.s32.totalorder %s1014_s21, 0 }
  0x5c   : > { %688 = dma.done.wait (%p1025_p9), [#allocation5], 16  }
  0x5d   : > { %690 = vsyncadd (%p1025_p9), [#allocation5], 4294967280 }
  0x5e   : > { %692 = dma.done.wait (%p1025_p9), [#allocation8], 16  }
  0x5f   : > { %694 = vsyncadd (%p1025_p9), [#allocation8], 4294967280 }
  0x60   : > { %214 = sfence }
  0x61   : > { %s237_s29 = sld [smem:[#allocation6]]  ;;  %s459_s6 = sld [smem:[#allocation6 + $0x4]]  ;;  %v233_v0 = vld [vmem:[%s201_s28] sm:$0x3]  ;;  %v234_v1 = vld [vmem:[%s201_s28 + $0x2] sm:$0x3] }
  0x62   : > { %s463_s30 = sld [smem:[#allocation6 + $0x8]]  ;;  %s467_s7 = sld [smem:[#allocation6 + $0xc]]  ;;  %v235_v2 = vld [vmem:[%s201_s28 + $0x4] sm:$0x3]  ;;  %v236_v4 = vld [vmem:[%s201_s28 + $0x6] sm:$0x3] }
  0x63   : > { %s456_s23 = sld [smem:[#allocation6 + $0x1]]  ;;  %s913_s9 = sld [smem:[#allocation7]] }
  0x64   : > { %s460_s20 = sld [smem:[#allocation6 + $0x5]]  ;;  %s915_s19 = sld [smem:[#allocation6 + $0x9]] }
  0x65   : > { %s468_s4 = sld [smem:[#allocation6 + $0xd]]  ;;  %s917_s5 = sld [smem:[#allocation7 + $0x1]] }
  0x66   : > { %s919_s21 = sld [smem:[#allocation6 + $0x2]]  ;;  %s461_s10 = sld [smem:[#allocation6 + $0x6]] }
  0x67   : > { %v257_v3 = vstv %s237_s29  ;;  %v259_v6 = vstv %s459_s6  ;;  %s465_s11 = sld [smem:[#allocation6 + $0xa]]  ;;  %s921_s27 = sld [smem:[#allocation6 + $0xe]] }
  0x68   : > { %v258_v5 = vmul.f32 %v257_v3, %v233_v0  ;;  %v262_v7 = vstv %s463_s30  ;;  %v260_v8 = vmul.f32 %v259_v6, %v234_v1  ;;  %v265_v10 = vstv %s467_s7  ;;  %s923_s22 = sld [smem:[#allocation6 + $0x3]]  ;;  %s925_s29 = sld [smem:[#allocation6 + $0x7]] }
  0x69   : > { %v263_v9 = vmul.f32 %v262_v7, %v235_v2  ;;  %v272_v11 = vstv %s456_s23  ;;  %v266_v13 = vmul.f32 %v265_v10, %v236_v4  ;;  %s927_s28 = sld [smem:[#allocation6 + $0xb]]  ;;  %s929_s6 = sld [smem:[#allocation6 + $0xf]]  ;;  %v268_v20 = vstv %s913_s9 }
  0x6a   : > { %v261_v12 = vadd.f32 %v260_v8, %v258_v5  ;;  %v273_v14 = vmul.f32 %v272_v11, %v233_v0  ;;  %v274_v15 = vstv %s460_s20  ;;  %v277_v17 = vstv %s915_s19  ;;  %s932_s30 = sld [smem:[#allocation7 + $0x2]]  ;;  %s938_s7 = sld [smem:[#allocation7 + $0x3]] }
  0x6b   : > { %v275_v16 = vmul.f32 %v274_v15, %v234_v1  ;;  %v280_v18 = vstv %s468_s4  ;;  %v278_v21 = vmul.f32 %v277_v17, %v235_v2  ;;  %v283_v32 = vstv %s917_s5  ;;  %s1026_s23 = sshll.u32 %s895_s26, 3  ;;  %s483_s20 = sshll.u32 %s713_s15, 7 }
  0x6c   : > { %v264_v19 = vadd.f32 %v263_v9, %v261_v12  ;;  %v281_v22 = vmul.f32 %v280_v18, %v236_v4  ;;  %v288_v24 = vstv %s919_s21  ;;  %v290_v25 = vstv %s461_s10  ;;  %s232_s9 = scalar_lea.vmem [#allocation9], %s1026_s23  ;;  %s954_s5 = scalar_lea.hbm %s1006_s3, %s483_s20 }
  0x6d   : > { %v276_v23 = vadd.f32 %v275_v16, %v273_v14  ;;  %v293_v26 = vstv %s465_s11  ;;  %v289_v28 = vmul.f32 %v288_v24, %v233_v0  ;;  %v291_v29 = vmul.f32 %v290_v25, %v234_v1  ;;  %s321_s21 = scalar_lea.sflag [#allocation4], %s895_s26  ;;  %p1027_p0 = scmp.ne.s32.totalorder %s1017_s24, 0 }
  0x6e   : > { %v267_v27 = vadd.f32 %v266_v13, %v264_v19  ;;  %v294_v30 = vmul.f32 %v293_v26, %v235_v2  ;;  %v296_v33 = vstv %s921_s27  ;;  %v304_v34 = vstv %s923_s22  ;;  %s335_s22 = sshll.u32 %s232_s9, 4  ;;  %s728_s15 = smov [#allocation9]   ;;  %s949_s22 = int_to_ptr.vmem [resolvable:$true] %s335_s22 }
  0x6f   : > { %v279_v31 = vadd.f32 %v278_v21, %v276_v23  ;;  %v292_v36 = vadd.f32 %v291_v29, %v289_v28  ;;  %v297_v37 = vmul.f32 %v296_v33, %v236_v4  ;;  %v305_v38 = vmul.f32 %v304_v34, %v233_v0  ;;  %s631_s10 = scalar_lea.vmem %s949_s22, 128  ;;  %s635_s11 = sshll.u32 %s728_s15, 4  ;;  %s636_s11 = int_to_ptr.vmem [resolvable:$false] %s635_s11 }
  0x70   : > { %v269_v35 = vadd.f32 %v268_v20, %v267_v27  ;;  %v306_v40 = vstv %s925_s29  ;;  %v309_v41 = vstv %s927_s28  ;;  %v312_v42 = vstv %s929_s6  ;;  %p632_p5 = scmp.ne.s32.totalorder %s949_s22, %s631_s10  ;;  %s637_s27 = scalar_lea.vmem %s636_s11, 256 }
  0x71   : > { %v282_v39 = vadd.f32 %v281_v22, %v279_v31  ;;  %v295_v44 = vadd.f32 %v294_v30, %v292_v36  ;;  %v307_v45 = vmul.f32 %v306_v40, %v234_v1  ;;  %v310_v46 = vmul.f32 %v309_v41, %v235_v2  ;;  %p638_p11 = scmp.lt.s32.totalorder %s949_s22, %s636_s11  ;;  %p639_p7 = scmp.lt.s32.totalorder %s637_s27, %s631_s10 }
  0x72   : > { %v270_v43 = vmax.f32 %v269_v35, 0.0  ;;  %v299_v48 = vstv %s932_s30  ;;  %v313_v51 = vmul.f32 %v312_v42, %v236_v4  ;;  %v315_v55 = vstv %s938_s7  ;;  %p633_p1 = pnand %p632_p5, %p1027_p0 }
  0x73   : > { %v284_v47 = vadd.f32 %v283_v32, %v282_v39  ;;  %v298_v49 = vadd.f32 %v297_v37, %v295_v44  ;;  %v308_v50 = vadd.f32 %v307_v45, %v305_v38  ;;  %p640_p3 = por %p639_p7, %p638_p11 }
  0x74   : > { %271 = vst [vmem:[%s232_s9] sm:$0x3] %v270_v43  ;;  %p634_p6 = pneg %p633_p1 }
  0x75   : > { %v285_v52 = vmax.f32 %v284_v47, 0.0  ;;  %v300_v53 = vadd.f32 %v299_v48, %v298_v49  ;;  %v311_v54 = vadd.f32 %v310_v46, %v308_v50 }
  0x76   : > { %p641_p8 = pnand %p640_p3, %p634_p6 }
  0x77   : > { %474 = vst [vmem:[%s232_s9 + $0x2] sm:$0x3] %v285_v52  ;;  %v301_v56 = vmax.f32 %v300_v53, 0.0  ;;  %v314_v57 = vadd.f32 %v313_v51, %v311_v54 }
  0x79   : > { %475 = vst [vmem:[%s232_s9 + $0x4] sm:$0x3] %v301_v56  ;;  %v316_v58 = vadd.f32 %v315_v55, %v314_v57 }
  0x7b   : > { %v317_v59 = vmax.f32 %v316_v58, 0.0 }
  0x7d   : > { %476 = vst [vmem:[%s232_s9 + $0x6] sm:$0x3] %v317_v59 }
  0x7e   : > { %644 = shalt.err (!%p641_p8)
}
  0x7f   : > { %s645_s29 = scalar_lea.hbm %s954_s5, 128  ;;  %s649_s30 = scalar_lea.hbm %s1006_s3, 256 }
  0x80   : > { %p646_p13 = scmp.ne.s32.totalorder %s954_s5, %s645_s29  ;;  %p650_p12 = scmp.lt.u32.totalorder %s954_s5, %s1006_s3 }
  0x81   : > { %p651_p2 = scmp.lt.u32.totalorder %s649_s30, %s645_s29  ;;  %p653_p5 = scmp.lt.u32.totalorder %s645_s29, %s954_s5 }
  0x82   : > { %p647_p4 = pnand %p646_p13, %p1027_p0 }
  0x83   : > { %p652_p9 = por %p651_p2, %p650_p12 }
  0x84   : > { %p648_p10 = pneg %p647_p4 }
  0x85   : > { %p654_p1 = por %p653_p5, %p652_p9 }
  0x87   : > { %p655_p6 = pnand %p654_p1, %p648_p10 }
  0x89   : > { %658 = shalt.err (!%p655_p6)
}
  0x8a   : > { %s729_s9 = smov 32   ;;  %s730_s20 = smov 2  }
  0x8b   : > { %494 = dma.vmem_to_hbm [thread:$0]  (%p1027_p0), %s949_s22, 128, %s954_s5, %s321_s21, %s729_s9, %s729_s9, %s730_s20  }
  0x8c PF: > { %s350_s19 = sand.u32 1, %s701_s12   ;;  %p1028_p11 = scmp.ne.s32.totalorder %s1018_s25, 0 }
  0x8d   : > { %p1029_p7 = scmp.ge.s32.totalorder %s721_s17, 2  ;;  %s351_s4 = scalar_lea.sflag [#allocation4], %s350_s19 }
  0x8f   : > { %p508_p3 = pnand %p1029_p7, %p1028_p11 }
  0x91   : > { %696 = dma.done.wait (!%p508_p3), %s351_s4, 128  }
  0x92   : > { %698 = vsyncadd (!%p508_p3), %s351_s4, 4294967168  ;;  %s21_s17 = sadd.s32 1, %s721_s17   ;;  %s1030_s12 = smov %s705_s13 }
  0x93   : > { %p18_p8 = scmp.ge.s32.totalorder %s21_s17, 4   ;;  %s1031_s13 = smov %s709_s14 }
  0x94   : > { %s1032_s14 = smov %s862_s8  ;;  %s1033_s15 = smov %s717_s16 }
  0x95   : > { %s1034_s16 = smov %s1036_s18  ;;  %20 = sbr.rel (!%p18_p8) target bundleno = 8 (0x8), region = 89 }
  0x9c   :  { %356 = vsyncpa [#allocation3], 1 }
  0x9d   :  { %358 = vsyncpa [#allocation3 + $0x1], 1 }
  0x9e   :  { %359 = vsyncpa [#allocation4], 1 }
  0x9f   :  { %361 = vsyncpa [#allocation4 + $0x1], 1 }
  0xa0   :  { %362 = vsyncpa [#allocation5], 1 }
  0xa1   :  { %364 = vsyncpa [#allocation5 + $0x1], 1 }
  0xa2   :  { %365 = vsyncpa [#allocation8], 1 }

</bundles_post_ra>
